<compile_context>
chip_gen: v5e
topology: v5e:2x2
jax: 0.10.0
libtpu: 0.0.40
codegen_flags: <defaults>
</compile_context>

<pallas_src>
import math

import jax
import jax.numpy as jnp
from jax.experimental import pallas as pl
from jax.experimental.pallas import tpu as pltpu

HIDDEN = (512, 256, 128, 64)  # fixed by Q_net512


def _round_up(n, m):
    return ((n + m - 1) // m) * m


# --------------------------------------------------------------------------- kernel
def _qnet_kernel(x_ref,
                 w1_ref, w2_ref, w3_ref, w4_ref, w5_ref,
                 b1_ref, b2_ref, b3_ref, b4_ref, b5_ref,
                 o_ref):
    """One (TB, state) batch tile through the full 5-layer MLP.

    Weights/biases are VMEM-resident blocks (constant index_maps). bf16 into the
    MXU, f32 accumulate, f32 bias + ReLU, then cast back to bf16 right away.
    """
    def layer(h_bf16, w_ref, b_ref, relu):
        y = jnp.dot(h_bf16, w_ref[...], preferred_element_type=jnp.float32)
        y = y + b_ref[...]
        if relu:
            return jnp.maximum(y, 0.0).astype(jnp.bfloat16)
        return y  # final layer stays f32

    h = layer(x_ref[...], w1_ref, b1_ref, True)
    h = layer(h,          w2_ref, b2_ref, True)
    h = layer(h,          w3_ref, b3_ref, True)
    h = layer(h,          w4_ref, b4_ref, True)
    y = layer(h,          w5_ref, b5_ref, False)
    o_ref[...] = y.astype(o_ref.dtype)


# ------------------------------------------------------------------- parameter packing
def pack_params(params):
    """Pack Q_net512 params for the kernel. Call ONCE and reuse across forward calls.

    params: list of 5 (W: (in, out) f32, b: (out,)/(1, out) f32) pairs.
    Pads the 128->64 layer to 128 output cols, the 64->A layer to 128 input rows
    and a_pad (multiple of 128) output cols. All padding is zeros (exact).
    Returns (ws_bf16, bs_f32, action_space, a_pad).
    """
    assert len(params) == 5, "Q_net512 has exactly 5 Linear layers"
    action_space = params[-1][0].shape[1]
    a_pad = _round_up(max(action_space, 128), 128)

    ws, bs = [], []
    for li, (w, b) in enumerate(params):
        w = jnp.asarray(w, jnp.float32)
        b = jnp.asarray(b, jnp.float32).reshape(1, -1)
        if li == 3:                            # 128 -> 64: pad outputs to 128
            w = jnp.pad(w, ((0, 0), (0, 128 - w.shape[1])))
            b = jnp.pad(b, ((0, 0), (0, 128 - b.shape[1])))
        elif li == 4:                          # 64 -> A: pad inputs to 128, outputs to a_pad
            w = jnp.pad(w, ((0, 128 - w.shape[0]), (0, a_pad - action_space)))
            b = jnp.pad(b, ((0, 0), (0, a_pad - action_space)))
        ws.append(w.astype(jnp.bfloat16))
        bs.append(b)
    return tuple(ws), tuple(bs), action_space, a_pad


# ----------------------------------------------------------------------- tile selection
def _select_tb(batch):
    """Batch tile: multiple of 16 (bf16 sublane pack), bounded padding waste,
    and >=2 grid steps once the batch is big enough (v7x megacore)."""
    if batch <= 16:
        return 16
    if batch < 32:
        return _round_up(batch, 16)
    if batch <= 2048:
        return _round_up(pl.cdiv(batch, 2), 16)       # two grid steps
    # large batches: pick the candidate minimizing padding waste
    return min((256, 512, 1024), key=lambda c: _round_up(batch, c) - batch)


# ---------------------------------------------------------------------------- forward
def q_net512_forward(x, packed, *, tb=None):
    """x: (batch, state_space) f32. packed: output of pack_params()."""
    ws, bs, action_space, a_pad = packed
    batch, state_space = x.shape
    assert ws[0].shape[0] == state_space, "state_space mismatch with packed params"

    if tb is None:
        tb = _select_tb(batch)
    else:
        tb = max(16, _round_up(int(tb), 16))   # guard: sublane / (8,128) constraint
    padded_batch = _round_up(batch, tb)

    x = x.astype(jnp.bfloat16)                 # bf16 into the MXU; halves x DMA
    if padded_batch != batch:
        x = jnp.pad(x, ((0, padded_batch - batch), (0, 0)))

    grid = (padded_batch // tb,)
    resident = lambda i: (0, 0)                # weights/biases resident across steps

    in_specs = (
        [pl.BlockSpec((tb, state_space), lambda i: (i, 0))]
        + [pl.BlockSpec(w.shape, resident) for w in ws]
        + [pl.BlockSpec(b.shape, resident) for b in bs]
    )
    out_specs = pl.BlockSpec((tb, a_pad), lambda i: (i, 0))

    dims = (state_space, 512, 256, 128, 128, a_pad)
    flops = 2 * padded_batch * sum(dims[i] * dims[i + 1] for i in range(len(dims) - 1))
    bytes_accessed = (sum(int(w.size) * 2 for w in ws)
                      + sum(int(b.size) * 4 for b in bs)
                      + padded_batch * state_space * 2     # bf16 x
                      + padded_batch * a_pad * 4)          # f32 out
    cost = pl.CostEstimate(flops=flops, transcendentals=0,
                           bytes_accessed=bytes_accessed)

    out = pl.pallas_call(
        _qnet_kernel,
        out_shape=jax.ShapeDtypeStruct((padded_batch, a_pad), jnp.float32),
        grid=grid,
        in_specs=in_specs,
        out_specs=out_specs,
        compiler_params=pltpu.CompilerParams(dimension_semantics=("parallel",)),
        cost_estimate=cost,
    )(x, *ws, *bs)

    return out[:batch, :action_space]


# ------------------------------------------------------------------- init + reference
def init_params(key, state_space, action_space):
    """Deterministic PyTorch-style Linear init: U(-1/sqrt(fan_in), 1/sqrt(fan_in))."""
    dims = [state_space, *HIDDEN, action_space]
    params = []
    for i in range(len(dims) - 1):
        fan_in, fan_out = dims[i], dims[i + 1]
        key, kw, kb = jax.random.split(key, 3)
        bound = 1.0 / math.sqrt(fan_in)
        w = jax.random.uniform(kw, (fan_in, fan_out), jnp.float32, -bound, bound)
        b = jax.random.uniform(kb, (1, fan_out), jnp.float32, -bound, bound)
        params.append((w, b))
    return params


def reference_forward(x, params):
    """Pure-JAX reference using the same bf16-into-MXU / f32-accumulate recipe."""
    h = x
    n = len(params)
    for i, (w, b) in enumerate(params):
        h = jnp.dot(h.astype(jnp.bfloat16), w.astype(jnp.bfloat16),
                    preferred_element_type=jnp.float32) + b.reshape(1, -1)
        if i < n - 1:
            h = jnp.maximum(h, 0.0)
    return h


if __name__ == "__main__":
    key = jax.random.PRNGKey(0)
    batch, state_space, action_space = 2, 8, 4

    k_x, k_p = jax.random.split(key)
    x = jax.random.normal(k_x, (batch, state_space), jnp.float32)
    params = init_params(k_p, state_space, action_space)

    packed = pack_params(params)          # hoisted out of the forward path (call once)
    y = q_net512_forward(x, packed)
    y = jax.block_until_ready(y)

    y_ref = reference_forward(x, params)
    assert y.shape == (batch, action_space)
    assert jnp.allclose(y, y_ref, atol=2e-3, rtol=2e-3), "mismatch vs reference"

    print("KERNEL_OK")
</pallas_src>

<mosaic_0001>
module attributes {stable_mosaic.version = 11 : i64} {
  func.func @_qnet_kernel(%arg0: i32, %arg1: memref<16x8xbf16, #tpu.memory_space<vmem>>, %arg2: memref<8x512xbf16, #tpu.memory_space<vmem>>, %arg3: memref<512x256xbf16, #tpu.memory_space<vmem>>, %arg4: memref<256x128xbf16, #tpu.memory_space<vmem>>, %arg5: memref<128x128xbf16, #tpu.memory_space<vmem>>, %arg6: memref<128x128xbf16, #tpu.memory_space<vmem>>, %arg7: memref<1x512xf32, #tpu.memory_space<vmem>>, %arg8: memref<1x256xf32, #tpu.memory_space<vmem>>, %arg9: memref<1x128xf32, #tpu.memory_space<vmem>>, %arg10: memref<1x128xf32, #tpu.memory_space<vmem>>, %arg11: memref<1x128xf32, #tpu.memory_space<vmem>>, %arg12: memref<16x128xf32, #tpu.memory_space<vmem>>) attributes {dimension_semantics = [#tpu.dimension_semantics<parallel>], iteration_bounds = array<i64: 1>, scalar_prefetch = 0 : i64, scratch_operands = 0 : i64, tpu.core_type = #tpu.core_type<tc>, window_params = [{transform_indices = @transform_0, window_bounds = array<i64: 16, 8>}, {pipeline_mode = #tpu.pipeline_mode<synchronous>, transform_indices = @transform_1, window_bounds = array<i64: 8, 512>}, {pipeline_mode = #tpu.pipeline_mode<synchronous>, transform_indices = @transform_2, window_bounds = array<i64: 512, 256>}, {pipeline_mode = #tpu.pipeline_mode<synchronous>, transform_indices = @transform_3, window_bounds = array<i64: 256, 128>}, {pipeline_mode = #tpu.pipeline_mode<synchronous>, transform_indices = @transform_4, window_bounds = array<i64: 128, 128>}, {pipeline_mode = #tpu.pipeline_mode<synchronous>, transform_indices = @transform_5, window_bounds = array<i64: 128, 128>}, {pipeline_mode = #tpu.pipeline_mode<synchronous>, transform_indices = @transform_6, window_bounds = array<i64: 1, 512>}, {pipeline_mode = #tpu.pipeline_mode<synchronous>, transform_indices = @transform_7, window_bounds = array<i64: 1, 256>}, {pipeline_mode = #tpu.pipeline_mode<synchronous>, transform_indices = @transform_8, window_bounds = array<i64: 1, 128>}, {pipeline_mode = #tpu.pipeline_mode<synchronous>, transform_indices = @transform_9, window_bounds = array<i64: 1, 128>}, {pipeline_mode = #tpu.pipeline_mode<synchronous>, transform_indices = @transform_10, window_bounds = array<i64: 1, 128>}, {transform_indices = @transform_11, window_bounds = array<i64: 16, 128>}]} {
    %c0 = arith.constant 0 : index
    %c0_0 = arith.constant 0 : index
    %0 = vector.load %arg1[%c0, %c0_0] : memref<16x8xbf16, #tpu.memory_space<vmem>>, vector<16x8xbf16>
    %c0_1 = arith.constant 0 : index
    %c0_2 = arith.constant 0 : index
    %1 = vector.load %arg2[%c0_1, %c0_2] : memref<8x512xbf16, #tpu.memory_space<vmem>>, vector<8x512xbf16>
    %cst = arith.constant dense<0.000000e+00> : vector<16x512xf32>
    %2 = tpu.matmul %0, %1, %cst {dimension_numbers = #tpu.dot_dimension_numbers<[1], [0], [0], [1], [0, 0, 1, 1], [], []>} : vector<16x8xbf16>, vector<8x512xbf16>, vector<16x512xf32> -> vector<16x512xf32>
    %c0_3 = arith.constant 0 : index
    %c0_4 = arith.constant 0 : index
    %3 = vector.load %arg7[%c0_3, %c0_4] : memref<1x512xf32, #tpu.memory_space<vmem>>, vector<1x512xf32>
    %4 = vector.broadcast %3 : vector<1x512xf32> to vector<16x512xf32>
    %5 = arith.addf %2, %4 : vector<16x512xf32>
    %cst_5 = arith.constant 0.000000e+00 : f32
    %6 = vector.broadcast %cst_5 : f32 to vector<16x512xf32>
    %7 = arith.maximumf %5, %6 : vector<16x512xf32>
    %8 = arith.truncf %7 : vector<16x512xf32> to vector<16x512xbf16>
    %c0_6 = arith.constant 0 : index
    %c0_7 = arith.constant 0 : index
    %9 = vector.load %arg3[%c0_6, %c0_7] : memref<512x256xbf16, #tpu.memory_space<vmem>>, vector<512x256xbf16>
    %cst_8 = arith.constant dense<0.000000e+00> : vector<16x256xf32>
    %10 = tpu.matmul %8, %9, %cst_8 {dimension_numbers = #tpu.dot_dimension_numbers<[1], [0], [0], [1], [0, 0, 1, 1], [], []>} : vector<16x512xbf16>, vector<512x256xbf16>, vector<16x256xf32> -> vector<16x256xf32>
    %c0_9 = arith.constant 0 : index
    %c0_10 = arith.constant 0 : index
    %11 = vector.load %arg8[%c0_9, %c0_10] : memref<1x256xf32, #tpu.memory_space<vmem>>, vector<1x256xf32>
    %12 = vector.broadcast %11 : vector<1x256xf32> to vector<16x256xf32>
    %13 = arith.addf %10, %12 : vector<16x256xf32>
    %cst_11 = arith.constant 0.000000e+00 : f32
    %14 = vector.broadcast %cst_11 : f32 to vector<16x256xf32>
    %15 = arith.maximumf %13, %14 : vector<16x256xf32>
    %16 = arith.truncf %15 : vector<16x256xf32> to vector<16x256xbf16>
    %c0_12 = arith.constant 0 : index
    %c0_13 = arith.constant 0 : index
    %17 = vector.load %arg4[%c0_12, %c0_13] : memref<256x128xbf16, #tpu.memory_space<vmem>>, vector<256x128xbf16>
    %cst_14 = arith.constant dense<0.000000e+00> : vector<16x128xf32>
    %18 = tpu.matmul %16, %17, %cst_14 {dimension_numbers = #tpu.dot_dimension_numbers<[1], [0], [0], [1], [0, 0, 1, 1], [], []>} : vector<16x256xbf16>, vector<256x128xbf16>, vector<16x128xf32> -> vector<16x128xf32>
    %c0_15 = arith.constant 0 : index
    %c0_16 = arith.constant 0 : index
    %19 = vector.load %arg9[%c0_15, %c0_16] : memref<1x128xf32, #tpu.memory_space<vmem>>, vector<1x128xf32>
    %20 = vector.broadcast %19 : vector<1x128xf32> to vector<16x128xf32>
    %21 = arith.addf %18, %20 : vector<16x128xf32>
    %cst_17 = arith.constant 0.000000e+00 : f32
    %22 = vector.broadcast %cst_17 : f32 to vector<16x128xf32>
    %23 = arith.maximumf %21, %22 : vector<16x128xf32>
    %24 = arith.truncf %23 : vector<16x128xf32> to vector<16x128xbf16>
    %c0_18 = arith.constant 0 : index
    %c0_19 = arith.constant 0 : index
    %25 = vector.load %arg5[%c0_18, %c0_19] : memref<128x128xbf16, #tpu.memory_space<vmem>>, vector<128x128xbf16>
    %cst_20 = arith.constant dense<0.000000e+00> : vector<16x128xf32>
    %26 = tpu.matmul %24, %25, %cst_20 {dimension_numbers = #tpu.dot_dimension_numbers<[1], [0], [0], [1], [0, 0, 1, 1], [], []>} : vector<16x128xbf16>, vector<128x128xbf16>, vector<16x128xf32> -> vector<16x128xf32>
    %c0_21 = arith.constant 0 : index
    %c0_22 = arith.constant 0 : index
    %27 = vector.load %arg10[%c0_21, %c0_22] : memref<1x128xf32, #tpu.memory_space<vmem>>, vector<1x128xf32>
    %28 = vector.broadcast %27 : vector<1x128xf32> to vector<16x128xf32>
    %29 = arith.addf %26, %28 : vector<16x128xf32>
    %cst_23 = arith.constant 0.000000e+00 : f32
    %30 = vector.broadcast %cst_23 : f32 to vector<16x128xf32>
    %31 = arith.maximumf %29, %30 : vector<16x128xf32>
    %32 = arith.truncf %31 : vector<16x128xf32> to vector<16x128xbf16>
    %c0_24 = arith.constant 0 : index
    %c0_25 = arith.constant 0 : index
    %33 = vector.load %arg6[%c0_24, %c0_25] : memref<128x128xbf16, #tpu.memory_space<vmem>>, vector<128x128xbf16>
    %cst_26 = arith.constant dense<0.000000e+00> : vector<16x128xf32>
    %34 = tpu.matmul %32, %33, %cst_26 {dimension_numbers = #tpu.dot_dimension_numbers<[1], [0], [0], [1], [0, 0, 1, 1], [], []>} : vector<16x128xbf16>, vector<128x128xbf16>, vector<16x128xf32> -> vector<16x128xf32>
    %c0_27 = arith.constant 0 : index
    %c0_28 = arith.constant 0 : index
    %35 = vector.load %arg11[%c0_27, %c0_28] : memref<1x128xf32, #tpu.memory_space<vmem>>, vector<1x128xf32>
    %36 = vector.broadcast %35 : vector<1x128xf32> to vector<16x128xf32>
    %37 = arith.addf %34, %36 : vector<16x128xf32>
    %c0_29 = arith.constant 0 : index
    %c0_30 = arith.constant 0 : index
    %38 = vector.load %arg12[%c0_29, %c0_30] : memref<16x128xf32, #tpu.memory_space<vmem>>, vector<16x128xf32>
    tpu.vector_store %arg12[%c0_29, %c0_30], %37 {strides = array<i32>} : memref<16x128xf32, #tpu.memory_space<vmem>>, vector<16x128xf32>,
    return
  }
  func.func @transform_0(%arg0: i32) -> (i32, i32) {
    %c0_i32 = arith.constant 0 : i32
    %c0_i32_0 = arith.constant 0 : i32
    return %arg0, %c0_i32 : i32, i32
  }
  func.func @transform_1(%arg0: i32) -> (i32, i32) {
    %c0_i32 = arith.constant 0 : i32
    %c0_i32_0 = arith.constant 0 : i32
    %c0_i32_1 = arith.constant 0 : i32
    return %c0_i32, %c0_i32_0 : i32, i32
  }
  func.func @transform_2(%arg0: i32) -> (i32, i32) {
    %c0_i32 = arith.constant 0 : i32
    %c0_i32_0 = arith.constant 0 : i32
    %c0_i32_1 = arith.constant 0 : i32
    return %c0_i32, %c0_i32_0 : i32, i32
  }
  func.func @transform_3(%arg0: i32) -> (i32, i32) {
    %c0_i32 = arith.constant 0 : i32
    %c0_i32_0 = arith.constant 0 : i32
    %c0_i32_1 = arith.constant 0 : i32
    return %c0_i32, %c0_i32_0 : i32, i32
  }
  func.func @transform_4(%arg0: i32) -> (i32, i32) {
    %c0_i32 = arith.constant 0 : i32
    %c0_i32_0 = arith.constant 0 : i32
    %c0_i32_1 = arith.constant 0 : i32
    return %c0_i32, %c0_i32_0 : i32, i32
  }
  func.func @transform_5(%arg0: i32) -> (i32, i32) {
    %c0_i32 = arith.constant 0 : i32
    %c0_i32_0 = arith.constant 0 : i32
    %c0_i32_1 = arith.constant 0 : i32
    return %c0_i32, %c0_i32_0 : i32, i32
  }
  func.func @transform_6(%arg0: i32) -> (i32, i32) {
    %c0_i32 = arith.constant 0 : i32
    %c0_i32_0 = arith.constant 0 : i32
    %c0_i32_1 = arith.constant 0 : i32
    return %c0_i32, %c0_i32_0 : i32, i32
  }
  func.func @transform_7(%arg0: i32) -> (i32, i32) {
    %c0_i32 = arith.constant 0 : i32
    %c0_i32_0 = arith.constant 0 : i32
    %c0_i32_1 = arith.constant 0 : i32
    return %c0_i32, %c0_i32_0 : i32, i32
  }
  func.func @transform_8(%arg0: i32) -> (i32, i32) {
    %c0_i32 = arith.constant 0 : i32
    %c0_i32_0 = arith.constant 0 : i32
    %c0_i32_1 = arith.constant 0 : i32
    return %c0_i32, %c0_i32_0 : i32, i32
  }
  func.func @transform_9(%arg0: i32) -> (i32, i32) {
    %c0_i32 = arith.constant 0 : i32
    %c0_i32_0 = arith.constant 0 : i32
    %c0_i32_1 = arith.constant 0 : i32
    return %c0_i32, %c0_i32_0 : i32, i32
  }
  func.func @transform_10(%arg0: i32) -> (i32, i32) {
    %c0_i32 = arith.constant 0 : i32
    %c0_i32_0 = arith.constant 0 : i32
    %c0_i32_1 = arith.constant 0 : i32
    return %c0_i32, %c0_i32_0 : i32, i32
  }
  func.func @transform_11(%arg0: i32) -> (i32, i32) {
    %c0_i32 = arith.constant 0 : i32
    %c0_i32_0 = arith.constant 0 : i32
    return %arg0, %c0_i32 : i32, i32
  }
}

</mosaic_0001>

<bundles_post_ra>
// kernel: tpu_custom_call.1
= control target key start
LH: loop header
LB: loop body
LE: loop exit
PB: predicated region body
PF: predicated region fallthrough
CT: control target
= control target key end

     0   :  { %16 = vsyncpa [#allocation3], 0  ;;  %s1865_s0 = inlined_call_operand.vmem [shape: bf16[16,8], index: 0, kind: input, shape index: {}]   ;;  %s1866_s1 = inlined_call_operand.hbm [shape: bf16[8,512], index: 1, kind: input, shape index: {}]   ;;  %s1867_s2 = inlined_call_operand.hbm [shape: bf16[512,256], index: 2, kind: input, shape index: {}]   ;;  %s1868_s3 = inlined_call_operand.hbm [shape: bf16[256,128], index: 3, kind: input, shape index: {}]   ;;  %s1869_s4 = inlined_call_operand.hbm [shape: bf16[128,128], index: 4, kind: input, shape index: {}]   ;;  %s1870_s5 = inlined_call_operand.hbm [shape: bf16[128,128], index: 5, kind: input, shape index: {}]   ;;  %s1871_s6 = inlined_call_operand.vmem [shape: f32[1,512], index: 6, kind: input, shape index: {}]   ;;  %s1872_s7 = inlined_call_operand.vmem [shape: f32[1,256], index: 7, kind: input, shape index: {}]   ;;  %s1873_s8 = inlined_call_operand.vmem [shape: f32[1,128], index: 8, kind: input, shape index: {}]   ;;  %s1874_s9 = inlined_call_operand.vmem [shape: f32[1,128], index: 9, kind: input, shape index: {}]   ;;  %s1875_s10 = inlined_call_operand.vmem [shape: f32[1,128], index: 10, kind: input, shape index: {}]   ;;  %s1876_s11 = inlined_call_operand.hbm [shape: f32[16,128], index: 11, kind: output, shape index: {}]  }
   0x1   :  { %17 = vsyncpa [#allocation6], 0 }
   0x2   :  { %18 = vsyncpa [#allocation9], 0  ;;  %s37_s19 = sshll.u32 %s1867_s2, 4  ;;  %s38_s19 = int_to_ptr.hbm [resolvable:$true] %s37_s19 }
   0x3   :  { %19 = vsyncpa [#allocation4], 0  ;;  %s1745_s20 = smov [#allocation5]   ;;  %s1746_s22 = smov 128  }
   0x4   :  { %s39_s21 = sshll.u32 %s1745_s20, 4  ;;  %s1747_s23 = smov 8   ;;  %s40_s21 = int_to_ptr.vmem [resolvable:$true] %s39_s21 }
   0x5   :  { %45 = dma.hbm_to_vmem [thread:$0]  %s38_s19, 8192, %s40_s21, [#allocation6], %s1746_s22, %s1746_s22, %s1747_s23  }
   0x6   :  { %s63_s26 = sshll.u32 %s1869_s4, 4  ;;  %s1748_s27 = smov [#allocation8]   ;;  %s64_s26 = int_to_ptr.hbm [resolvable:$true] %s63_s26 }
   0x7   :  { %s65_s28 = sshll.u32 %s1748_s27, 4  ;;  %s27_s30 = sshll.u32 %s1866_s1, 4  ;;  %s66_s28 = int_to_ptr.vmem [resolvable:$true] %s65_s28  ;;  %s28_s30 = int_to_ptr.hbm [resolvable:$true] %s27_s30 }
   0x8   :  { %s1749_s12 = smov 64   ;;  %s1750_s13 = smov 4  }
   0x9   :  { %71 = dma.hbm_to_vmem [thread:$0]  %s64_s26, 1024, %s66_s28, [#allocation9], %s1749_s12, %s1749_s12, %s1750_s13  }
   0xa   :  { %s50_s16 = sshll.u32 %s1868_s3, 4  ;;  %s1751_s17 = smov [#allocation2]   ;;  %s51_s16 = int_to_ptr.hbm [resolvable:$true] %s50_s16 }
   0xb   :  { %s29_s18 = sshll.u32 %s1751_s17, 4  ;;  %s1752_s4 = smov [#allocation7]   ;;  %s30_s18 = int_to_ptr.vmem [resolvable:$true] %s29_s18 }
   0xc   :  { %32 = dma.hbm_to_vmem [thread:$0]  %s28_s30, 256, %s30_s18, [#allocation3]  }
   0xd   :  { %s52_s19 = sshll.u32 %s1752_s4, 4  ;;  %s76_s1 = sshll.u32 %s1870_s5, 4  ;;  %s53_s19 = int_to_ptr.vmem [resolvable:$true] %s52_s19  ;;  %s77_s1 = int_to_ptr.hbm [resolvable:$true] %s76_s1 }
   0xe   :  { %58 = dma.hbm_to_vmem [thread:$0]  %s51_s16, 2048, %s53_s19, [#allocation6], %s1749_s12, %s1749_s12, %s1750_s13  }
   0xf   :  { %s1753_s24 = smov [#allocation10]  }
  0x10   :  { %s78_s25 = sshll.u32 %s1753_s24, 4  ;;  %s79_s25 = int_to_ptr.vmem [resolvable:$true] %s78_s25 }
  0x11   :  { %84 = dma.hbm_to_vmem [thread:$0]  %s77_s1, 1024, %s79_s25, [#allocation9], %s1749_s12, %s1749_s12, %s1750_s13  }
  0x12   :  { %1737 = dma.done.wait [#allocation3], 256  }
  0x13   :  { %1738 = vsyncadd [#allocation3], 4294967040 }
  0x14   :  { %1739 = dma.done.wait [#allocation6], 10240  }
  0x15   :  { %1740 = vsyncadd [#allocation6], 4294957056 }
  0x16   :  { %1741 = dma.done.wait [#allocation9], 2048  }
  0x17   :  { %1742 = vsyncadd [#allocation9], 4294965248  ;;  %v118_v0 = vld [vmem:[#allocation2] sm:$0xff]  ;;  %v119_v1 = vld [vmem:[#allocation2 + $0x8] sm:$0xff]  ;;  %vm149_vm0 = vcmask 1043456   ;;  %vm145_vm1 = vcmask 64512  }
  0x18   :  { %v137_v2 = vunpack.c.l.b16 %v118_v0  ;;  %v138_v3 = vunpack.c.h.b16 %v118_v0  ;;  %v139_v4 = vunpack.c.l.b16 %v119_v1  ;;  %v140_v5 = vunpack.c.h.b16 %v119_v1  ;;  %v1157_v6 = vld [vmem:[#allocation5 + $0x70] sm:$0xf]  ;;  %v1499_v7 = vld [vmem:[#allocation5 + $0x74] sm:$0xf0]  ;;  %v1149_v15 = vld [vmem:[#allocation5 + $0x60] sm:$0xf] }
  0x19   :  { %v1221_v8 = vld [vmem:[#allocation5 + $0xf0] sm:$0xf]  ;;  %v1515_v9 = vld [vmem:[#allocation5 + $0xf4] sm:$0xf0]  ;;  %v1497_v16 = vld [vmem:[#allocation5 + $0x64] sm:$0xf0]  ;;  %v1158_v19 = vor.u32 %v1499_v7, %v1157_v6 }
  0x1a   :  { %v141_v10 = vpack.c.b16 %v137_v2, %v137_v2  ;;  %v142_v11 = vpack.c.b16 %v138_v3, %v138_v3  ;;  %v143_v12 = vpack.c.b16 %v139_v4, %v139_v4  ;;  %v144_v13 = vpack.c.b16 %v140_v5, %v140_v5  ;;  %v1483_v14 = vld [vmem:[%s1865_s0] sm:$0xff]  ;;  %v1213_v17 = vld [vmem:[#allocation5 + $0xe0] sm:$0xf]  ;;  %v1531_v21 = vld [vmem:[#allocation5 + $0x174] sm:$0xf0]  ;;  %s1754_s12 = smov [#allocation11]  }
  0x1b   :  { %v1285_v18 = vld [vmem:[#allocation5 + $0x170] sm:$0xf]  ;;  %v1222_v20 = vor.u32 %v1515_v9, %v1221_v8  ;;  %v1547_v23 = vld [vmem:[#allocation5 + $0x1f4] sm:$0xf0]  ;;  %v1513_v28 = vld [vmem:[#allocation5 + $0xe4] sm:$0xf0]  ;;  %v1150_v33 = vor.u32 %v1497_v16, %v1149_v15 }
  0x1c   :  { %v1349_v22 = vld [vmem:[#allocation5 + $0x1f0] sm:$0xf]  ;;  %v151_v24 = vsel %vm149_vm0, %v141_v10, 0  ;;  %v154_v25 = vsel %vm149_vm0, %v142_v11, 0  ;;  %v157_v26 = vsel %vm149_vm0, %v143_v12, 0  ;;  %v160_v27 = vsel %vm149_vm0, %v144_v13, 0 }
  0x1d   :  { %169 = vmatpush.bf16.msra.mxu0 %v151_v24  ;;  %183 = vmatpush.bf16.msra.mxu1 %v154_v25  ;;  %v1286_v29 = vor.u32 %v1531_v21, %v1285_v18  ;;  %v1350_v30 = vor.u32 %v1547_v23, %v1349_v22  ;;  %v1141_v31 = vld [vmem:[#allocation5 + $0x50] sm:$0xf]  ;;  %v1277_v32 = vld [vmem:[#allocation5 + $0x160] sm:$0xf]  ;;  %v1214_v34 = vor.u32 %v1513_v28, %v1213_v17  ;;  %v1529_v35 = vld [vmem:[#allocation5 + $0x164] sm:$0xf0] }
  0x1e   :  { %197 = vmatpush.bf16.msra.mxu2 %v157_v26  ;;  %211 = vmatpush.bf16.msra.mxu3 %v160_v27  ;;  %v1341_v36 = vld [vmem:[#allocation5 + $0x1e0] sm:$0xf]  ;;  %v1545_v37 = vld [vmem:[#allocation5 + $0x1e4] sm:$0xf0]  ;;  %v1495_v38 = vld [vmem:[#allocation5 + $0x54] sm:$0xf0]  ;;  %v1278_v41 = vor.u32 %v1529_v35, %v1277_v32 }
  0x1f   :  { %v1205_v39 = vld [vmem:[#allocation5 + $0xd0] sm:$0xf]  ;;  %v1511_v40 = vld [vmem:[#allocation5 + $0xd4] sm:$0xf0]  ;;  %v1342_v42 = vor.u32 %v1545_v37, %v1341_v36  ;;  %v1133_v43 = vld [vmem:[#allocation5 + $0x40] sm:$0xf]  ;;  %v1142_v45 = vor.u32 %v1495_v38, %v1141_v31 }
  0x20   :  { %1095 = vmatmul.msk.bf16.vlgmr.msra.gmra.mxu0 %vm145_vm1, %v1483_v14  ;;  %1096 = vmatmul.msk.bf16.vlgmr.msra.gmra.mxu1 %vm145_vm1, %v1483_v14  ;;  %v1269_v44 = vld [vmem:[#allocation5 + $0x150] sm:$0xf]  ;;  %v1206_v46 = vor.u32 %v1511_v40, %v1205_v39  ;;  %v1527_v47 = vld [vmem:[#allocation5 + $0x154] sm:$0xf0]  ;;  %v1493_v50 = vld [vmem:[#allocation5 + $0x44] sm:$0xf0] }
  0x21   :  { %620 = vmatpush.bf16.msrb.mxu0 %v1158_v19  ;;  %634 = vmatpush.bf16.msrb.mxu1 %v1222_v20  ;;  %v1333_v48 = vld [vmem:[#allocation5 + $0x1d0] sm:$0xf]  ;;  %v1543_v49 = vld [vmem:[#allocation5 + $0x1d4] sm:$0xf0]  ;;  %v1197_v51 = vld [vmem:[#allocation5 + $0xc0] sm:$0xf]  ;;  %v1270_v53 = vor.u32 %v1527_v47, %v1269_v44  ;;  %v1134_v57 = vor.u32 %v1493_v50, %v1133_v43 }
  0x22   :  { %1097 = vmatmul.msk.bf16.vlgmr.msra.gmra.mxu2 %vm145_vm1, %v1483_v14  ;;  %1098 = vmatmul.msk.bf16.vlgmr.msra.gmra.mxu3 %vm145_vm1, %v1483_v14  ;;  %v1509_v52 = vld [vmem:[#allocation5 + $0xc4] sm:$0xf0]  ;;  %v1334_v54 = vor.u32 %v1543_v49, %v1333_v48  ;;  %v1125_v55 = vld [vmem:[#allocation5 + $0x30] sm:$0xf]  ;;  %v1261_v56 = vld [vmem:[#allocation5 + $0x140] sm:$0xf] }
  0x23   :  { %648 = vmatpush.bf16.msrb.mxu2 %v1286_v29  ;;  %662 = vmatpush.bf16.msrb.mxu3 %v1350_v30  ;;  %v1198_v58 = vor.u32 %v1509_v52, %v1197_v51  ;;  %v1525_v59 = vld [vmem:[#allocation5 + $0x144] sm:$0xf0]  ;;  %v1325_v60 = vld [vmem:[#allocation5 + $0x1c0] sm:$0xf]  ;;  %v1491_v62 = vld [vmem:[#allocation5 + $0x34] sm:$0xf0] }
  0x24   :  { %v1541_v61 = vld [vmem:[#allocation5 + $0x1c4] sm:$0xf0]  ;;  %v1189_v63 = vld [vmem:[#allocation5 + $0xb0] sm:$0xf]  ;;  %v1507_v0 = vld [vmem:[#allocation5 + $0xb4] sm:$0xf0]  ;;  %v1262_v1 = vor.u32 %v1525_v59, %v1261_v56  ;;  %v1126_v8 = vor.u32 %v1491_v62, %v1125_v55 }
  0x25   :  { %621 = vmatpush.bf16.msrb.mxu0 %v1150_v33  ;;  %635 = vmatpush.bf16.msrb.mxu1 %v1214_v34  ;;  %v1326_v2 = vor.u32 %v1541_v61, %v1325_v60  ;;  %v1117_v3 = vld [vmem:[#allocation5 + $0x20] sm:$0xf]  ;;  %v1489_v4 = vld [vmem:[#allocation5 + $0x24] sm:$0xf0]  ;;  %v1253_v6 = vld [vmem:[#allocation5 + $0x130] sm:$0xf]  ;;  %v1190_v9 = vor.u32 %v1507_v0, %v1189_v63 }
  0x26   :  { %v1181_v5 = vld [vmem:[#allocation5 + $0xa0] sm:$0xf]  ;;  %v1523_v7 = vld [vmem:[#allocation5 + $0x134] sm:$0xf0]  ;;  %v1317_v10 = vld [vmem:[#allocation5 + $0x1b0] sm:$0xf]  ;;  %v1118_v17 = vor.u32 %v1489_v4, %v1117_v3 }
  0x27   :  { %649 = vmatpush.bf16.msrb.mxu2 %v1278_v41  ;;  %663 = vmatpush.bf16.msrb.mxu3 %v1342_v42  ;;  %v1539_v11 = vld [vmem:[#allocation5 + $0x1b4] sm:$0xf0]  ;;  %v1505_v12 = vld [vmem:[#allocation5 + $0xa4] sm:$0xf0]  ;;  %v1254_v13 = vor.u32 %v1523_v7, %v1253_v6  ;;  %v1109_v15 = vld [vmem:[#allocation5 + $0x10] sm:$0xf] }
  0x28   :  { %v1318_v14 = vor.u32 %v1539_v11, %v1317_v10  ;;  %v1245_v16 = vld [vmem:[#allocation5 + $0x120] sm:$0xf]  ;;  %v1182_v18 = vor.u32 %v1505_v12, %v1181_v5  ;;  %v1521_v19 = vld [vmem:[#allocation5 + $0x124] sm:$0xf0]  ;;  %v1487_v22 = vld [vmem:[#allocation5 + $0x14] sm:$0xf0] }
  0x29   :  { %622 = vmatpush.bf16.msrb.mxu0 %v1142_v45  ;;  %636 = vmatpush.bf16.msrb.mxu1 %v1206_v46  ;;  %v1309_v20 = vld [vmem:[#allocation5 + $0x1a0] sm:$0xf]  ;;  %v1537_v21 = vld [vmem:[#allocation5 + $0x1a4] sm:$0xf0]  ;;  %v1173_v23 = vld [vmem:[#allocation5 + $0x90] sm:$0xf]  ;;  %v1246_v25 = vor.u32 %v1521_v19, %v1245_v16  ;;  %v1110_v27 = vor.u32 %v1487_v22, %v1109_v15 }
  0x2a   :  { %v1503_v24 = vld [vmem:[#allocation5 + $0x94] sm:$0xf0]  ;;  %v1310_v26 = vor.u32 %v1537_v21, %v1309_v20  ;;  %v1101_v29 = vld [vmem:[#allocation5] sm:$0xf]  ;;  %v1485_v30 = vld [vmem:[#allocation5 + $0x4] sm:$0xf0] }
  0x2b   :  { %650 = vmatpush.bf16.msrb.mxu2 %v1270_v53  ;;  %664 = vmatpush.bf16.msrb.mxu3 %v1334_v54  ;;  %v1174_v28 = vor.u32 %v1503_v24, %v1173_v23  ;;  %v1165_v31 = vld [vmem:[#allocation5 + $0x80] sm:$0xf]  ;;  %v1501_v32 = vld [vmem:[#allocation5 + $0x84] sm:$0xf0]  ;;  %v1102_v33 = vor.u32 %v1485_v30, %v1101_v29  ;;  %v1498_v35 = vld [vmem:[#allocation5 + $0x74] sm:$0xf] }
  0x2c   :  { %v1166_v34 = vor.u32 %v1501_v32, %v1165_v31  ;;  %v1159_v36 = vld [vmem:[#allocation5 + $0x78] sm:$0xf0]  ;;  %v1514_v37 = vld [vmem:[#allocation5 + $0xf4] sm:$0xf]  ;;  %v1237_v40 = vld [vmem:[#allocation5 + $0x110] sm:$0xf] }
  0x2d   :  { %623 = vmatpush.bf16.msrb.mxu0 %v1134_v57  ;;  %637 = vmatpush.bf16.msrb.mxu1 %v1198_v58  ;;  %v1162_v38 = vor.u32 %v1498_v35, %v1159_v36  ;;  %v1223_v39 = vld [vmem:[#allocation5 + $0xf8] sm:$0xf0]  ;;  %v1519_v41 = vld [vmem:[#allocation5 + $0x114] sm:$0xf0]  ;;  %v1301_v44 = vld [vmem:[#allocation5 + $0x190] sm:$0xf] }
  0x2e   :  { %v1226_v42 = vor.u32 %v1514_v37, %v1223_v39  ;;  %v1238_v43 = vor.u32 %v1519_v41, %v1237_v40  ;;  %v1535_v45 = vld [vmem:[#allocation5 + $0x194] sm:$0xf0]  ;;  %v1496_v47 = vld [vmem:[#allocation5 + $0x64] sm:$0xf]  ;;  %v1151_v48 = vld [vmem:[#allocation5 + $0x68] sm:$0xf0] }
  0x2f   :  { %651 = vmatpush.bf16.msrb.mxu2 %v1262_v1  ;;  %665 = vmatpush.bf16.msrb.mxu3 %v1326_v2  ;;  %v1302_v46 = vor.u32 %v1535_v45, %v1301_v44  ;;  %v1512_v49 = vld [vmem:[#allocation5 + $0xe4] sm:$0xf]  ;;  %v1154_v50 = vor.u32 %v1496_v47, %v1151_v48  ;;  %v1215_v51 = vld [vmem:[#allocation5 + $0xe8] sm:$0xf0]  ;;  %v1229_v52 = vld [vmem:[#allocation5 + $0x100] sm:$0xf] }
  0x30   :  { %v1218_v53 = vor.u32 %v1512_v49, %v1215_v51  ;;  %v1517_v54 = vld [vmem:[#allocation5 + $0x104] sm:$0xf0]  ;;  %v1293_v55 = vld [vmem:[#allocation5 + $0x180] sm:$0xf]  ;;  %v1530_v59 = vld [vmem:[#allocation5 + $0x174] sm:$0xf] }
  0x31   :  { %624 = vmatpush.bf16.msrb.mxu0 %v1126_v8  ;;  %638 = vmatpush.bf16.msrb.mxu1 %v1190_v9  ;;  %v1533_v56 = vld [vmem:[#allocation5 + $0x184] sm:$0xf0]  ;;  %v1230_v57 = vor.u32 %v1517_v54, %v1229_v52  ;;  %v1287_v60 = vld [vmem:[#allocation5 + $0x178] sm:$0xf0]  ;;  %v1546_v61 = vld [vmem:[#allocation5 + $0x1f4] sm:$0xf] }
  0x32   :  { %v1294_v58 = vor.u32 %v1533_v56, %v1293_v55  ;;  %v1290_v62 = vor.u32 %v1530_v59, %v1287_v60  ;;  %v1351_v63 = vld [vmem:[#allocation5 + $0x1f8] sm:$0xf0]  ;;  %v1494_v0 = vld [vmem:[#allocation5 + $0x54] sm:$0xf]  ;;  %v1528_v7 = vld [vmem:[#allocation5 + $0x164] sm:$0xf] }
  0x33   :  { %652 = vmatpush.bf16.msrb.mxu2 %v1254_v13  ;;  %666 = vmatpush.bf16.msrb.mxu3 %v1318_v14  ;;  %v1143_v1 = vld [vmem:[#allocation5 + $0x58] sm:$0xf0]  ;;  %v1354_v2 = vor.u32 %v1546_v61, %v1351_v63  ;;  %v1510_v4 = vld [vmem:[#allocation5 + $0xd4] sm:$0xf]  ;;  %v1279_v8 = vld [vmem:[#allocation5 + $0x168] sm:$0xf0] }
  0x34   :  { %v1146_v3 = vor.u32 %v1494_v0, %v1143_v1  ;;  %v1207_v5 = vld [vmem:[#allocation5 + $0xd8] sm:$0xf0]  ;;  %v1282_v9 = vor.u32 %v1528_v7, %v1279_v8  ;;  %v1544_v10 = vld [vmem:[#allocation5 + $0x1e4] sm:$0xf]  ;;  %v1343_v11 = vld [vmem:[#allocation5 + $0x1e8] sm:$0xf0] }
  0x35   :  { %625 = vmatpush.bf16.msrb.mxu0 %v1118_v17  ;;  %639 = vmatpush.bf16.msrb.mxu1 %v1182_v18  ;;  %v1210_v6 = vor.u32 %v1510_v4, %v1207_v5  ;;  %v1346_v12 = vor.u32 %v1544_v10, %v1343_v11  ;;  %v1492_v13 = vld [vmem:[#allocation5 + $0x44] sm:$0xf]  ;;  %v1135_v14 = vld [vmem:[#allocation5 + $0x48] sm:$0xf0]  ;;  %v1526_v19 = vld [vmem:[#allocation5 + $0x154] sm:$0xf] }
  0x36   :  { %v1508_v15 = vld [vmem:[#allocation5 + $0xc4] sm:$0xf]  ;;  %v1138_v16 = vor.u32 %v1492_v13, %v1135_v14  ;;  %v1199_v17 = vld [vmem:[#allocation5 + $0xc8] sm:$0xf0]  ;;  %v1271_v20 = vld [vmem:[#allocation5 + $0x158] sm:$0xf0] }
  0x37   :  { %653 = vmatpush.bf16.msrb.mxu2 %v1246_v25  ;;  %667 = vmatpush.bf16.msrb.mxu3 %v1310_v26  ;;  %v1202_v18 = vor.u32 %v1508_v15, %v1199_v17  ;;  %v1542_v21 = vld [vmem:[#allocation5 + $0x1d4] sm:$0xf]  ;;  %v1274_v22 = vor.u32 %v1526_v19, %v1271_v20  ;;  %v1335_v23 = vld [vmem:[#allocation5 + $0x1d8] sm:$0xf0]  ;;  %v1524_v31 = vld [vmem:[#allocation5 + $0x144] sm:$0xf] }
  0x38   :  { %v1338_v24 = vor.u32 %v1542_v21, %v1335_v23  ;;  %v1490_v25 = vld [vmem:[#allocation5 + $0x34] sm:$0xf]  ;;  %v1127_v26 = vld [vmem:[#allocation5 + $0x38] sm:$0xf0]  ;;  %v1263_v32 = vld [vmem:[#allocation5 + $0x148] sm:$0xf0] }
  0x39   :  { %626 = vmatpush.bf16.msrb.mxu0 %v1110_v27  ;;  %640 = vmatpush.bf16.msrb.mxu1 %v1174_v28  ;;  %v1506_v27 = vld [vmem:[#allocation5 + $0xb4] sm:$0xf]  ;;  %v1130_v28 = vor.u32 %v1490_v25, %v1127_v26  ;;  %v1191_v29 = vld [vmem:[#allocation5 + $0xb8] sm:$0xf0]  ;;  %v1327_v35 = vld [vmem:[#allocation5 + $0x1c8] sm:$0xf0] }
  0x3a   :  { %v1194_v30 = vor.u32 %v1506_v27, %v1191_v29  ;;  %v1488_v37 = vld [vmem:[#allocation5 + $0x24] sm:$0xf]  ;;  %v1183_v41 = vld [vmem:[#allocation5 + $0xa8] sm:$0xf0]  ;;  %v1255_v44 = vld [vmem:[#allocation5 + $0x138] sm:$0xf0] }
  0x3b   :  { %654 = vmatpush.bf16.msrb.mxu2 %v1238_v43  ;;  %668 = vmatpush.bf16.msrb.mxu3 %v1302_v46  ;;  %v1504_v39 = vld [vmem:[#allocation5 + $0xa4] sm:$0xf]  ;;  %v1522_v43 = vld [vmem:[#allocation5 + $0x134] sm:$0xf]  ;;  %v1319_v47 = vld [vmem:[#allocation5 + $0x1b8] sm:$0xf0] }
  0x3c   :  { %v1538_v45 = vld [vmem:[#allocation5 + $0x1b4] sm:$0xf]  ;;  %v1258_v46 = vor.u32 %v1522_v43, %v1255_v44  ;;  %v1520_v54 = vld [vmem:[#allocation5 + $0x124] sm:$0xf]  ;;  %v1247_v55 = vld [vmem:[#allocation5 + $0x128] sm:$0xf0] }
  0x3d   :  { %627 = vmatpush.bf16.msrb.mxu0 %v1102_v33  ;;  %641 = vmatpush.bf16.msrb.mxu1 %v1166_v34  ;;  %v1540_v33 = vld [vmem:[#allocation5 + $0x1c4] sm:$0xf]  ;;  %v1266_v34 = vor.u32 %v1524_v31, %v1263_v32  ;;  %v1322_v48 = vor.u32 %v1538_v45, %v1319_v47  ;;  %v1486_v49 = vld [vmem:[#allocation5 + $0x14] sm:$0xf]  ;;  %v1311_v59 = vld [vmem:[#allocation5 + $0x1a8] sm:$0xf0] }
  0x3e   :  { %v1330_v36 = vor.u32 %v1540_v33, %v1327_v35  ;;  %v1502_v51 = vld [vmem:[#allocation5 + $0x94] sm:$0xf]  ;;  %v1484_v60 = vld [vmem:[#allocation5 + $0x4] sm:$0xf]  ;;  %v1167_v0 = vld [vmem:[#allocation5 + $0x88] sm:$0xf0] }
  0x3f   :  { %655 = vmatpush.bf16.msrb.mxu2 %v1230_v57  ;;  %669 = vmatpush.bf16.msrb.mxu3 %v1294_v58  ;;  %v1250_v57 = vor.u32 %v1520_v54, %v1247_v55  ;;  %v1536_v58 = vld [vmem:[#allocation5 + $0x1a4] sm:$0xf]  ;;  %v1239_v4 = vld [vmem:[#allocation5 + $0x118] sm:$0xf0]  ;;  %v1534_v5 = vld [vmem:[#allocation5 + $0x194] sm:$0xf] }
  0x40   :  { %v1314_v61 = vor.u32 %v1536_v58, %v1311_v59  ;;  %v1500_v63 = vld [vmem:[#allocation5 + $0x84] sm:$0xf]  ;;  %v1231_v10 = vld [vmem:[#allocation5 + $0x108] sm:$0xf0]  ;;  %v1550_v54 = vld [vmem:[#allocation7 + $0x10] sm:$0xff]  ;;  %s1074_s13 = sshll.u32 %s1754_s12, 4  ;;  %s1075_s13 = int_to_ptr.vmem [resolvable:$true] %s1074_s13 }
  0x41   :  { %676 = vmatpush.bf16.msra.mxu0 %v1162_v38  ;;  %690 = vmatpush.bf16.msra.mxu1 %v1226_v42  ;;  %v1119_v38 = vld [vmem:[#allocation5 + $0x28] sm:$0xf0]  ;;  %v1186_v42 = vor.u32 %v1504_v39, %v1183_v41  ;;  %v1532_v11 = vld [vmem:[#allocation5 + $0x184] sm:$0xf]  ;;  %v1562_v55 = vld [vmem:[#allocation7 + $0x70] sm:$0xff] }
  0x42   :  { %v1122_v40 = vor.u32 %v1488_v37, %v1119_v38  ;;  %v1548_v58 = vld [vmem:[#allocation7] sm:$0xff] }
  0x43   :  { %704 = vmatpush.bf16.msra.mxu2 %v1290_v62  ;;  %718 = vmatpush.bf16.msra.mxu3 %v1354_v2  ;;  %v1103_v62 = vld [vmem:[#allocation5 + $0x8] sm:$0xf0]  ;;  %v1170_v2 = vor.u32 %v1500_v63, %v1167_v0  ;;  %v1560_v59 = vld [vmem:[#allocation7 + $0x60] sm:$0xff]  ;;  %v294_v63 = vld [vmem:[%s1872_s7] sm:$0x3] }
  0x44   :  { %v1106_v1 = vor.u32 %v1484_v60, %v1103_v62  ;;  %v1559_v60 = vld [vmem:[#allocation7 + $0x58] sm:$0xff]  ;;  %v1558_v62 = vld [vmem:[#allocation7 + $0x50] sm:$0xff] }
  0x45   :  { %677 = vmatpush.bf16.msra.mxu0 %v1154_v50  ;;  %691 = vmatpush.bf16.msra.mxu1 %v1218_v53  ;;  %v1111_v50 = vld [vmem:[#allocation5 + $0x18] sm:$0xf0] }
  0x46   :  { %v1114_v52 = vor.u32 %v1486_v49, %v1111_v50  ;;  %v1175_v53 = vld [vmem:[#allocation5 + $0x98] sm:$0xf0]  ;;  %v1554_v49 = vld [vmem:[#allocation7 + $0x30] sm:$0xff]  ;;  %v1553_v50 = vld [vmem:[#allocation7 + $0x28] sm:$0xff] }
  0x47   :  { %705 = vmatpush.bf16.msra.mxu2 %v1282_v9  ;;  %719 = vmatpush.bf16.msra.mxu3 %v1346_v12  ;;  %v1178_v56 = vor.u32 %v1502_v51, %v1175_v53  ;;  %v1516_v9 = vld [vmem:[#allocation5 + $0x104] sm:$0xf]  ;;  %v120_v12 = vld [vmem:[%s1871_s6] sm:$0xf]  ;;  %v1563_v53 = vld [vmem:[#allocation7 + $0x78] sm:$0xff] }
  0x48   :  { %v1234_v15 = vor.u32 %v1516_v9, %v1231_v10  ;;  %v122_v17 = vperm.slane %v120_v12, 0  ;;  %v125_v31 = vperm.slane %v120_v12, 3  ;;  %v1552_v51 = vld [vmem:[#allocation7 + $0x20] sm:$0xff] }
  0x49   :  { %678 = vmatpush.bf16.msra.mxu0 %v1146_v3  ;;  %692 = vmatpush.bf16.msra.mxu1 %v1210_v6  ;;  %v1518_v3 = vld [vmem:[#allocation5 + $0x114] sm:$0xf]  ;;  %v1303_v6 = vld [vmem:[#allocation5 + $0x198] sm:$0xf0] }
  0x4a   :  { %v1242_v7 = vor.u32 %v1518_v3, %v1239_v4  ;;  %v1306_v8 = vor.u32 %v1534_v5, %v1303_v6  ;;  %v1556_v4 = vld [vmem:[#allocation7 + $0x40] sm:$0xff] }
  0x4b   :  { %706 = vmatpush.bf16.msra.mxu2 %v1274_v22  ;;  %720 = vmatpush.bf16.msra.mxu3 %v1338_v24 }
  0x4d   :  { %679 = vmatpush.bf16.msra.mxu0 %v1138_v16  ;;  %693 = vmatpush.bf16.msra.mxu1 %v1202_v18  ;;  %v1295_v16 = vld [vmem:[#allocation5 + $0x188] sm:$0xf0]  ;;  %v123_v18 = vperm.slane %v120_v12, 1 }
  0x4e   :  { %v1298_v19 = vor.u32 %v1532_v11, %v1295_v16 }
  0x4f   :  { %707 = vmatpush.bf16.msra.mxu2 %v1266_v34  ;;  %721 = vmatpush.bf16.msra.mxu3 %v1330_v36  ;;  %v1555_v34 = vld [vmem:[#allocation7 + $0x38] sm:$0xff] }
  0x51   :  { %680 = vmatpush.bf16.msra.mxu0 %v1130_v28  ;;  %694 = vmatpush.bf16.msra.mxu1 %v1194_v30  ;;  %v124_v30 = vperm.slane %v120_v12, 2 }
  0x53   :  { %708 = vmatpush.bf16.msra.mxu2 %v1258_v46  ;;  %722 = vmatpush.bf16.msra.mxu3 %v1322_v48 }
  0x55   :  { %681 = vmatpush.bf16.msra.mxu0 %v1122_v40  ;;  %695 = vmatpush.bf16.msra.mxu1 %v1186_v42 }
  0x57   :  { %709 = vmatpush.bf16.msra.mxu2 %v1250_v57  ;;  %723 = vmatpush.bf16.msra.mxu3 %v1314_v61  ;;  %v1561_v57 = vld [vmem:[#allocation7 + $0x68] sm:$0xff] }
  0x59   :  { %682 = vmatpush.bf16.msra.mxu0 %v1114_v52  ;;  %696 = vmatpush.bf16.msra.mxu1 %v1178_v56  ;;  %v1551_v52 = vld [vmem:[#allocation7 + $0x18] sm:$0xff]  ;;  %v1549_v56 = vld [vmem:[#allocation7 + $0x8] sm:$0xff] }
  0x5b   :  { %710 = vmatpush.bf16.msra.mxu2 %v1242_v7  ;;  %724 = vmatpush.bf16.msra.mxu3 %v1306_v8 }
  0x5d   :  { %683 = vmatpush.bf16.msra.mxu0 %v1106_v1  ;;  %697 = vmatpush.bf16.msra.mxu1 %v1170_v2  ;;  %v1557_v1 = vld [vmem:[#allocation7 + $0x48] sm:$0xff]  ;;  %v296_v2 = vperm.slane %v294_v63, 0 }
  0x5f   :  { %711 = vmatpush.bf16.msra.mxu2 %v1234_v15  ;;  %725 = vmatpush.bf16.msra.mxu3 %v1298_v19 }
  0x9d   :  { %v171_v13 = vpop.f32.mrf.mxu0  ;;  %v185_v14 = vpop.f32.mrf.mxu1 }
  0x9e   :  { %v172_v20 = vadd.f32 %v171_v13, %v122_v17  ;;  %v186_v21 = vadd.f32 %v185_v14, %v123_v18 }
  0xa0   :  { %v218_v26 = vmax.f32 %v172_v20, 0.0  ;;  %v219_v27 = vmax.f32 %v186_v21, 0.0 }
  0xa5   :  { %v199_v22 = vpop.f32.mrf.mxu2  ;;  %v213_v23 = vpop.f32.mrf.mxu3 }
  0xa6   :  { %v173_v24 = vpop.f32.mrf.mxu0  ;;  %v187_v25 = vpop.f32.mrf.mxu1  ;;  %v200_v37 = vadd.f32 %v199_v22, %v124_v30  ;;  %v214_v38 = vadd.f32 %v213_v23, %v125_v31 }
  0xa7   :  { %v174_v28 = vadd.f32 %v173_v24, %v122_v17  ;;  %v188_v29 = vadd.f32 %v187_v25, %v123_v18  ;;  %v297_v18 = vperm.slane %v294_v63, 1 }
  0xa8   :  { %v220_v43 = vmax.f32 %v200_v37, 0.0  ;;  %v221_v44 = vmax.f32 %v214_v38, 0.0 }
  0xa9   :  { %v222_v32 = vmax.f32 %v174_v28, 0.0  ;;  %v223_v33 = vmax.f32 %v188_v29, 0.0 }
  0xab   :  { %v226_v35 = vpack.c.bf16 %v222_v32, %v218_v26  ;;  %v227_v36 = vpack.c.bf16 %v223_v33, %v219_v27 }
  0xad   :  { %v201_v39 = vpop.f32.mrf.mxu2  ;;  %v215_v40 = vpop.f32.mrf.mxu3  ;;  %628 = vmatmul.bf16.vlgmr.msrb.gmra.mxu0 %v226_v35  ;;  %642 = vmatmul.bf16.vlgmr.msrb.gmra.mxu1 %v227_v36 }
  0xae   :  { %v202_v41 = vadd.f32 %v201_v39, %v124_v30  ;;  %v216_v42 = vadd.f32 %v215_v40, %v125_v31  ;;  %870 = vmatpush.bf16.msrb.mxu0 %v1555_v34  ;;  %884 = vmatpush.bf16.msrb.mxu1 %v1563_v53 }
  0xb0   :  { %v224_v45 = vmax.f32 %v202_v41, 0.0  ;;  %v225_v46 = vmax.f32 %v216_v42, 0.0  ;;  %v1571_v41 = vld [vmem:[#allocation8 + $0x38] sm:$0xff]  ;;  %v1570_v42 = vld [vmem:[#allocation8 + $0x30] sm:$0xff] }
  0xb2   :  { %v228_v47 = vpack.c.bf16 %v224_v45, %v220_v43  ;;  %v229_v48 = vpack.c.bf16 %v225_v46, %v221_v44  ;;  %871 = vmatpush.bf16.msrb.mxu0 %v1554_v49  ;;  %885 = vmatpush.bf16.msrb.mxu1 %v1562_v55  ;;  %v1569_v43 = vld [vmem:[#allocation8 + $0x28] sm:$0xff]  ;;  %v1568_v44 = vld [vmem:[#allocation8 + $0x20] sm:$0xff]  ;;  %v1567_v45 = vld [vmem:[#allocation8 + $0x18] sm:$0xff] }
  0xb3   :  { %v1566_v46 = vld [vmem:[#allocation8 + $0x10] sm:$0xff]  ;;  %v1579_v49 = vld [vmem:[#allocation10 + $0x38] sm:$0xff] }
  0xb4   :  { %656 = vmatmul.bf16.vlgmr.msrb.gmra.mxu2 %v228_v47  ;;  %670 = vmatmul.bf16.vlgmr.msrb.gmra.mxu3 %v229_v48  ;;  %v1590_v55 = vld [vmem:[%s1873_s8] ss:$0 sm:$0xff] }
  0xb5   :  { %969 = vmatpush.bf16.msrb.mxu2 %v1571_v41  ;;  %1054 = vmatpush.bf16.msrb.mxu3 %v1579_v49 }
  0xb6   :  { %872 = vmatpush.bf16.msrb.mxu0 %v1553_v50  ;;  %886 = vmatpush.bf16.msrb.mxu1 %v1561_v57  ;;  %v1578_v50 = vld [vmem:[#allocation10 + $0x30] sm:$0xff] }
  0xb9   :  { %970 = vmatpush.bf16.msrb.mxu2 %v1570_v42  ;;  %1055 = vmatpush.bf16.msrb.mxu3 %v1578_v50 }
  0xba   :  { %873 = vmatpush.bf16.msrb.mxu0 %v1552_v51  ;;  %887 = vmatpush.bf16.msrb.mxu1 %v1560_v59  ;;  %v1577_v51 = vld [vmem:[#allocation10 + $0x28] sm:$0xff] }
  0xbd   :  { %684 = vmatmul.bf16.vlgmr.msra.gmra.mxu0 %v226_v35  ;;  %698 = vmatmul.bf16.vlgmr.msra.gmra.mxu1 %v227_v36 }
  0xbe   :  { %874 = vmatpush.bf16.msrb.mxu0 %v1551_v52  ;;  %888 = vmatpush.bf16.msrb.mxu1 %v1559_v60  ;;  %v1576_v52 = vld [vmem:[#allocation10 + $0x20] sm:$0xff] }
  0xbf   :  { %971 = vmatpush.bf16.msrb.mxu2 %v1569_v43  ;;  %1056 = vmatpush.bf16.msrb.mxu3 %v1577_v51 }
  0xc2   :  { %875 = vmatpush.bf16.msrb.mxu0 %v1550_v54  ;;  %889 = vmatpush.bf16.msrb.mxu1 %v1558_v62 }
  0xc3   :  { %972 = vmatpush.bf16.msrb.mxu2 %v1568_v44  ;;  %1057 = vmatpush.bf16.msrb.mxu3 %v1576_v52 }
  0xc4   :  { %712 = vmatmul.bf16.vlgmr.msra.gmra.mxu2 %v228_v47  ;;  %726 = vmatmul.bf16.vlgmr.msra.gmra.mxu3 %v229_v48  ;;  %v1565_v47 = vld [vmem:[#allocation8 + $0x8] sm:$0xff]  ;;  %v1564_v48 = vld [vmem:[#allocation8] sm:$0xff] }
  0xc6   :  { %876 = vmatpush.bf16.msrb.mxu0 %v1549_v56  ;;  %890 = vmatpush.bf16.msrb.mxu1 %v1557_v1  ;;  %v1575_v1 = vld [vmem:[#allocation10 + $0x18] sm:$0xff] }
  0xc7   :  { %973 = vmatpush.bf16.msrb.mxu2 %v1567_v45  ;;  %1058 = vmatpush.bf16.msrb.mxu3 %v1575_v1 }
  0xca   :  { %877 = vmatpush.bf16.msrb.mxu0 %v1548_v58  ;;  %891 = vmatpush.bf16.msrb.mxu1 %v1556_v4  ;;  %v1572_v4 = vld [vmem:[#allocation10] sm:$0xff] }
  0xcb   :  { %974 = vmatpush.bf16.msrb.mxu2 %v1566_v46 }
  0xcf   :  { %975 = vmatpush.bf16.msrb.mxu2 %v1565_v47 }
  0xd3   :  { %976 = vmatpush.bf16.msrb.mxu2 %v1564_v48 }
 0x12a   :  { %v629_v61 = vpop.f32.mrf.mxu0  ;;  %v643_v0 = vpop.f32.mrf.mxu1 }
 0x12b   :  { %v630_v5 = vadd.f32 %v629_v61, %v296_v2 }
 0x12d   :  { %v644_v9 = vadd.f32 %v643_v0, %v630_v5 }
 0x132   :  { %v631_v3 = vpop.f32.mrf.mxu0  ;;  %v645_v8 = vpop.f32.mrf.mxu1 }
 0x133   :  { %v632_v10 = vadd.f32 %v631_v3, %v296_v2  ;;  %v1574_v2 = vld [vmem:[#allocation10 + $0x10] sm:$0xff]  ;;  %v1573_v3 = vld [vmem:[#allocation10 + $0x8] sm:$0xff] }
 0x134   :  { %1059 = vmatpush.bf16.msrb.mxu3 %v1574_v2 }
 0x135   :  { %v646_v13 = vadd.f32 %v645_v8, %v632_v10 }
 0x137   :  { %v657_v6 = vpop.f32.mrf.mxu2  ;;  %v671_v7 = vpop.f32.mrf.mxu3 }
 0x138   :  { %v658_v11 = vadd.f32 %v657_v6, %v644_v9  ;;  %1060 = vmatpush.bf16.msrb.mxu3 %v1573_v3  ;;  %v1591_v6 = vld [vmem:[%s1874_s9] ss:$0 sm:$0xff]  ;;  %s1076_s9 = sshll.u32 %s1876_s11, 4  ;;  %s1077_s9 = int_to_ptr.hbm [resolvable:$true] %s1076_s9 }
 0x13a   :  { %v685_v12 = vpop.f32.mrf.mxu0  ;;  %v672_v16 = vadd.f32 %v671_v7, %v658_v11  ;;  %v699_v20 = vpop.f32.mrf.mxu1 }
 0x13b   :  { %v686_v23 = vadd.f32 %v685_v12, %v297_v18 }
 0x13c   :  { %v732_v21 = vmax.f32 %v672_v16, 0.0  ;;  %1061 = vmatpush.bf16.msrb.mxu3 %v1572_v4 }
 0x13d   :  { %v700_v28 = vadd.f32 %v699_v20, %v686_v23 }
 0x13f   :  { %v659_v14 = vpop.f32.mrf.mxu2  ;;  %v673_v15 = vpop.f32.mrf.mxu3 }
 0x140   :  { %v660_v17 = vadd.f32 %v659_v14, %v646_v13  ;;  %v1592_v13 = vld [vmem:[%s1875_s10] ss:$0 sm:$0xff] }
 0x142   :  { %v674_v19 = vadd.f32 %v673_v15, %v660_v17  ;;  %v687_v25 = vpop.f32.mrf.mxu0  ;;  %v701_v31 = vpop.f32.mrf.mxu1 }
 0x143   :  { %v688_v29 = vadd.f32 %v687_v25, %v297_v18 }
 0x144   :  { %v734_v22 = vmax.f32 %v674_v19, 0.0 }
 0x145   :  { %v702_v32 = vadd.f32 %v701_v31, %v688_v29 }
 0x146   :  { %v736_v24 = vpack.c.bf16 %v734_v22, %v732_v21 }
 0x147   :  { %v713_v26 = vpop.f32.mrf.mxu2  ;;  %v727_v27 = vpop.f32.mrf.mxu3 }
 0x148   :  { %878 = vmatmul.bf16.vlgmr.msrb.gmra.mxu0 %v736_v24  ;;  %v714_v30 = vadd.f32 %v713_v26, %v700_v28 }
 0x14a   :  { %v728_v34 = vadd.f32 %v727_v27, %v714_v30 }
 0x14c   :  { %v733_v38 = vmax.f32 %v728_v34, 0.0 }
 0x14f   :  { %v715_v33 = vpop.f32.mrf.mxu2  ;;  %v729_v36 = vpop.f32.mrf.mxu3 }
 0x150   :  { %v716_v35 = vadd.f32 %v715_v33, %v702_v32 }
 0x152   :  { %v730_v37 = vadd.f32 %v729_v36, %v716_v35 }
 0x154   :  { %v735_v39 = vmax.f32 %v730_v37, 0.0 }
 0x156   :  { %v737_v40 = vpack.c.bf16 %v735_v39, %v733_v38 }
 0x158   :  { %892 = vmatmul.bf16.vlgmr.msrb.gmra.mxu1 %v737_v40 }
 0x1c5   :  { %v879_v53 = vpop.f32.mrf.mxu0 }
 0x1c6   :  { %v880_v57 = vadd.f32 %v1590_v55, %v879_v53 }
 0x1cd   :  { %v881_v56 = vpop.f32.mrf.mxu0 }
 0x1ce   :  { %v882_v58 = vadd.f32 %v1590_v55, %v881_v56 }
 0x1d5   :  { %v893_v54 = vpop.f32.mrf.mxu1 }
 0x1d6   :  { %v894_v59 = vadd.f32 %v893_v54, %v880_v57 }
 0x1d8   :  { %v898_v62 = vmax.f32 %v894_v59, 0.0 }
 0x1dd   :  { %v895_v60 = vpop.f32.mrf.mxu1 }
 0x1de   :  { %v896_v61 = vadd.f32 %v895_v60, %v882_v58 }
 0x1e0   :  { %v899_v63 = vmax.f32 %v896_v61, 0.0 }
 0x1e2   :  { %v900_v0 = vpack.c.bf16 %v899_v63, %v898_v62 }
 0x1e4   :  { %977 = vmatmul.bf16.vlgmr.msrb.gmra.mxu2 %v900_v0 }
 0x267   :  { %v978_v5 = vpop.f32.mrf.mxu2 }
 0x268   :  { %v979_v7 = vadd.f32 %v1591_v6, %v978_v5 }
 0x26a   :  { %v983_v10 = vmax.f32 %v979_v7, 0.0 }
 0x26f   :  { %v980_v8 = vpop.f32.mrf.mxu2 }
 0x270   :  { %v981_v9 = vadd.f32 %v1591_v6, %v980_v8 }
 0x272   :  { %v984_v11 = vmax.f32 %v981_v9, 0.0 }
 0x274   :  { %v985_v12 = vpack.c.bf16 %v984_v11, %v983_v10 }
 0x276   :  { %1062 = vmatmul.bf16.vlgmr.msrb.gmra.mxu3 %v985_v12 }
 0x2f9   :  { %v1063_v14 = vpop.f32.mrf.mxu3 }
 0x2fa   :  { %v1064_v15 = vadd.f32 %v1592_v13, %v1063_v14 }
 0x2fc   :  { %1068 = vst [vmem:[#allocation11] sm:$0xff] %v1064_v15 }
 0x301   :  { %v1065_v16 = vpop.f32.mrf.mxu3 }
 0x302   :  { %v1066_v17 = vadd.f32 %v1592_v13, %v1065_v16 }
 0x304   :  { %1069 = vst [vmem:[#allocation11 + $0x8] sm:$0xff] %v1066_v17 }
 0x305   :  { %1082 = dma.vmem_to_hbm [thread:$0]  %s1075_s13, 256, %s1077_s9, [#allocation4], %s1746_s22, %s1746_s22, %s1747_s23  }
 0x306   :  { %1743 = dma.done.wait [#allocation4], 256  }
 0x307   :  { %1744 = vsyncadd [#allocation4], 4294967040 }
 0x308   :  { %1087 = vsyncpa [#allocation3], 1 }
 0x309   :  { %1088 = vsyncpa [#allocation6], 1 }
 0x30a   :  { %1089 = vsyncpa [#allocation9], 1 }
 0x30b   :  { %1090 = vsyncpa [#allocation4], 1 }

</bundles_post_ra>
